<compile_context>
chip_gen: v6e
topology: v6e:2x2x1
jax: 0.10.0
libtpu: 0.0.40
codegen_flags: <defaults>
</compile_context>

<pallas_src>
import functools

import jax
import jax.numpy as jnp
from jax.experimental import pallas as pl
from jax.experimental.pallas import tpu as pltpu


def _round_up(x, m):
    return ((x + m - 1) // m) * m


def _deepwalk_loss_kernel(et_ref, ec_ref, tab_ref, out_ref, m_scr, l_scr,
                          *, n_valid, tn, mask_n):
    """One grid step: (m, n) = (M tile, N tile of the vocabulary)."""
    n = pl.program_id(1)
    n_last = pl.num_programs(1) - 1

    # Reset the running logsumexp state at the start of each M tile.
    @pl.when(n == 0)
    def _():
        m_scr[...] = jnp.full_like(m_scr, -jnp.inf)
        l_scr[...] = jnp.zeros_like(l_scr)

    et = et_ref[...]          # (TM, D) bf16  (target embeddings)
    tab = tab_ref[...]        # (D, TN) bf16  (transposed table tile)

    # logits tile: (TM, TN), f32 accumulate on the MXU.
    logits = jnp.dot(et, tab, preferred_element_type=jnp.float32)

    if mask_n:
        # Mask padded vocabulary columns so they contribute exp(-inf) = 0.
        col = n * tn + jax.lax.broadcasted_iota(jnp.int32, logits.shape, 1)
        logits = jnp.where(col < n_valid, logits, -jnp.inf)

    # Running log-sum-exp over the N axis.
    m_old = m_scr[...]                                            # (TM, 1)
    m_new = jnp.maximum(m_old, jnp.max(logits, axis=1, keepdims=True))
    l_scr[...] = (l_scr[...] * jnp.exp(m_old - m_new)
                  + jnp.sum(jnp.exp(logits - m_new), axis=1, keepdims=True))
    m_scr[...] = m_new

    @pl.when(n == n_last)
    def _():
        ec = ec_ref[...]                                          # (TM, D) f32
        score = jnp.sum(et.astype(jnp.float32) * ec, axis=1, keepdims=True)
        lse = m_scr[...] + jnp.log(l_scr[...])
        out_ref[...] = lse - score                                # (TM, 1)


def deepwalk_forward(emb_table, target, context, *, tn_max=2048):
    """Pallas implementation of DeepWalk.forward.

    emb_table: (N, D) float32 embedding weights (nn.Embedding.weight)
    target, context: (B, T) int32 node indices
    returns scalar float32 loss = mean over (B, T) of
        logsumexp_j(<e_t, e_j>) - <e_t, e_c>
    which equals torch.mean(torch.mean(-log(score/scale), axis=1)).
    """
    B, T = target.shape
    N, D = emb_table.shape
    M = B * T

    # Embedding gathers in plain JAX (single fused XLA gather).
    # TODO(synk): move the gathers in-kernel via scalar-prefetched indices to
    # avoid materializing (B*T, D) activations in HBM for large batches.
    et = emb_table[target.reshape(M)]    # (M, D) f32
    ec = emb_table[context.reshape(M)]   # (M, D) f32

    # Tiling.
    TM = min(128, _round_up(M, 8))
    M_pad = _round_up(M, TM)
    TN = min(_round_up(N, 128), tn_max)
    N_pad = _round_up(N, TN)

    if M_pad != M:
        pad = M_pad - M
        et = jnp.pad(et, ((0, pad), (0, 0)))
        ec = jnp.pad(ec, ((0, pad), (0, 0)))

    tab_t = emb_table.T                  # (D, N): N in the lane dimension
    if N_pad != N:
        tab_t = jnp.pad(tab_t, ((0, 0), (0, N_pad - N)))

    # bf16 for the MXU operands; f32 for everything accuracy-critical.
    et_bf = et.astype(jnp.bfloat16)
    tab_bf = tab_t.astype(jnp.bfloat16)

    m_tiles = M_pad // TM
    n_tiles = N_pad // TN

    kernel = functools.partial(
        _deepwalk_loss_kernel, n_valid=N, tn=TN, mask_n=(N_pad != N))

    per_row = pl.pallas_call(
        kernel,
        out_shape=jax.ShapeDtypeStruct((M_pad, 1), jnp.float32),
        grid_spec=pltpu.PrefetchScalarGridSpec(
            num_scalar_prefetch=0,
            grid=(m_tiles, n_tiles),
            in_specs=[
                pl.BlockSpec((TM, D), lambda m, n: (m, 0)),   # target emb tile
                pl.BlockSpec((TM, D), lambda m, n: (m, 0)),   # context emb tile
                pl.BlockSpec((D, TN), lambda m, n: (0, n)),   # table.T tile
            ],
            out_specs=pl.BlockSpec((TM, 1), lambda m, n: (m, 0)),
            scratch_shapes=[
                pltpu.VMEM((TM, 1), jnp.float32),   # running max
                pltpu.VMEM((TM, 1), jnp.float32),   # running sum-of-exp
            ],
        ),
        compiler_params=pltpu.CompilerParams(
            dimension_semantics=("parallel", "arbitrary"),
        ),
    )(et_bf, ec, tab_bf)

    # Final mean in f32 over the valid B*T rows (== mean(mean(loss, axis=1))).
    return jnp.mean(per_row[:M, 0])


def _deepwalk_reference(emb_table, target, context):
    """Pure-JAX reference mirroring the PyTorch forward literally."""
    embed_t = emb_table[target]                                  # (B, T, D)
    embed_c = emb_table[context]                                 # (B, T, D)
    score = jnp.exp(jnp.sum(embed_t * embed_c, axis=2))          # (B, T)
    logits = jnp.einsum("btd,nd->btn", embed_t, emb_table)       # (B, T, N)
    scale = jnp.sum(jnp.exp(logits), axis=2)                     # (B, T)
    loss = -jnp.log(score / scale)
    return jnp.mean(jnp.mean(loss, axis=1))


def _run_case(key, N, D, B, T, tn_max=2048, tag=""):
    k_emb, k_tgt, k_ctx = jax.random.split(key, 3)
    emb_table = jax.random.normal(k_emb, (N, D), dtype=jnp.float32) * 0.1
    target = jax.random.randint(k_tgt, (B, T), 0, N, dtype=jnp.int32)
    context = jax.random.randint(k_ctx, (B, T), 0, N, dtype=jnp.int32)

    loss = deepwalk_forward(emb_table, target, context, tn_max=tn_max)
    loss = jax.block_until_ready(loss)
    ref = _deepwalk_reference(emb_table, target, context)
    assert jnp.allclose(loss, ref, rtol=2e-3, atol=2e-3), (tag, loss, ref)


if __name__ == "__main__":
    key = jax.random.PRNGKey(0)
    k1, k2 = jax.random.split(key)

    # Small shapes consistent with the module (nodes=N, emb_dim=D, (B, T) walks).
    _run_case(k1, N=128, D=32, B=2, T=8, tag="toy")

    # Multi-tile path: padded M (208 -> 256, 2 M-tiles), padded/masked N
    # (300 -> 384, 3 N-tiles at TN=128).
    _run_case(k2, N=300, D=32, B=16, T=13, tn_max=128, tag="multi-tile")

    print("KERNEL_OK")
</pallas_src>

<mosaic_0001>
module attributes {stable_mosaic.version = 11 : i64} {
  func.func @_deepwalk_loss_kernel(%arg0: i32, %arg1: i32, %arg2: memref<16x32xbf16, #tpu.memory_space<vmem>>, %arg3: memref<16x32xf32, #tpu.memory_space<vmem>>, %arg4: memref<32x128xbf16, #tpu.memory_space<vmem>>, %arg5: memref<16x1xf32, #tpu.memory_space<vmem>>, %arg6: memref<16x1xf32, #tpu.memory_space<vmem>>, %arg7: memref<16x1xf32, #tpu.memory_space<vmem>>) attributes {dimension_semantics = [#tpu.dimension_semantics<parallel>, #tpu.dimension_semantics<arbitrary>], iteration_bounds = array<i64: 1, 1>, scalar_prefetch = 0 : i64, scratch_operands = 2 : i64, tpu.core_type = #tpu.core_type<tc>, window_params = [{transform_indices = @transform_0, window_bounds = array<i64: 16, 32>}, {transform_indices = @transform_1, window_bounds = array<i64: 16, 32>}, {transform_indices = @transform_2, window_bounds = array<i64: 32, 128>}, {transform_indices = @transform_3, window_bounds = array<i64: 16, 1>}]} {
    %c0_i32 = arith.constant 0 : i32
    %0 = arith.cmpi eq, %arg1, %c0_i32 : i32
    %1 = arith.extui %0 : i1 to i32
    %c0_i32_0 = arith.constant 0 : i32
    %2 = arith.cmpi ne, %1, %c0_i32_0 : i32
    scf.if %2 {
      %cst_16 = arith.constant 0xFF800000 : f32
      %25 = vector.broadcast %cst_16 : f32 to vector<16x1xf32>
      %c0_17 = arith.constant 0 : index
      %c0_18 = arith.constant 0 : index
      %26 = vector.load %arg6[%c0_17, %c0_18] : memref<16x1xf32, #tpu.memory_space<vmem>>, vector<16x1xf32>
      tpu.vector_store %arg6[%c0_17, %c0_18], %25 {strides = array<i32>} : memref<16x1xf32, #tpu.memory_space<vmem>>, vector<16x1xf32>,
      %cst_19 = arith.constant 0.000000e+00 : f32
      %27 = vector.broadcast %cst_19 : f32 to vector<16x1xf32>
      %c0_20 = arith.constant 0 : index
      %c0_21 = arith.constant 0 : index
      %28 = vector.load %arg7[%c0_20, %c0_21] : memref<16x1xf32, #tpu.memory_space<vmem>>, vector<16x1xf32>
      tpu.vector_store %arg7[%c0_20, %c0_21], %27 {strides = array<i32>} : memref<16x1xf32, #tpu.memory_space<vmem>>, vector<16x1xf32>,
    } else {
    }
    %c0 = arith.constant 0 : index
    %c0_1 = arith.constant 0 : index
    %3 = vector.load %arg2[%c0, %c0_1] : memref<16x32xbf16, #tpu.memory_space<vmem>>, vector<16x32xbf16>
    %c0_2 = arith.constant 0 : index
    %c0_3 = arith.constant 0 : index
    %4 = vector.load %arg4[%c0_2, %c0_3] : memref<32x128xbf16, #tpu.memory_space<vmem>>, vector<32x128xbf16>
    %cst = arith.constant dense<0.000000e+00> : vector<16x128xf32>
    %5 = tpu.matmul %3, %4, %cst {dimension_numbers = #tpu.dot_dimension_numbers<[1], [0], [0], [1], [0, 0, 1, 1], [], []>} : vector<16x32xbf16>, vector<32x128xbf16>, vector<16x128xf32> -> vector<16x128xf32>
    %c0_4 = arith.constant 0 : index
    %c0_5 = arith.constant 0 : index
    %6 = vector.load %arg6[%c0_4, %c0_5] : memref<16x1xf32, #tpu.memory_space<vmem>>, vector<16x1xf32>
    %cst_6 = arith.constant dense<0xFF800000> : vector<16xf32>
    %7 = vector.multi_reduction <maximumf>, %5, %cst_6 [1] : vector<16x128xf32> to vector<16xf32>
    %8 = vector.shape_cast %7 : vector<16xf32> to vector<16x1xf32>
    %9 = arith.maximumf %6, %8 : vector<16x1xf32>
    %c0_7 = arith.constant 0 : index
    %c0_8 = arith.constant 0 : index
    %10 = vector.load %arg7[%c0_7, %c0_8] : memref<16x1xf32, #tpu.memory_space<vmem>>, vector<16x1xf32>
    %11 = arith.subf %6, %9 : vector<16x1xf32>
    %12 = math.exp %11 : vector<16x1xf32>
    %13 = arith.mulf %10, %12 : vector<16x1xf32>
    %14 = vector.broadcast %9 : vector<16x1xf32> to vector<16x128xf32>
    %15 = arith.subf %5, %14 : vector<16x128xf32>
    %16 = math.exp %15 : vector<16x128xf32>
    %cst_9 = arith.constant dense<0.000000e+00> : vector<16xf32>
    %17 = vector.multi_reduction <add>, %16, %cst_9 [1] : vector<16x128xf32> to vector<16xf32>
    %18 = vector.shape_cast %17 : vector<16xf32> to vector<16x1xf32>
    %19 = arith.addf %13, %18 : vector<16x1xf32>
    %c0_10 = arith.constant 0 : index
    %c0_11 = arith.constant 0 : index
    %20 = vector.load %arg7[%c0_10, %c0_11] : memref<16x1xf32, #tpu.memory_space<vmem>>, vector<16x1xf32>
    tpu.vector_store %arg7[%c0_10, %c0_11], %19 {strides = array<i32>} : memref<16x1xf32, #tpu.memory_space<vmem>>, vector<16x1xf32>,
    %c0_12 = arith.constant 0 : index
    %c0_13 = arith.constant 0 : index
    %21 = vector.load %arg6[%c0_12, %c0_13] : memref<16x1xf32, #tpu.memory_space<vmem>>, vector<16x1xf32>
    tpu.vector_store %arg6[%c0_12, %c0_13], %9 {strides = array<i32>} : memref<16x1xf32, #tpu.memory_space<vmem>>, vector<16x1xf32>,
    %c0_i32_14 = arith.constant 0 : i32
    %22 = arith.cmpi eq, %arg1, %c0_i32_14 : i32
    %23 = arith.extui %22 : i1 to i32
    %c0_i32_15 = arith.constant 0 : i32
    %24 = arith.cmpi ne, %23, %c0_i32_15 : i32
    scf.if %24 {
      %c0_16 = arith.constant 0 : index
      %c0_17 = arith.constant 0 : index
      %25 = vector.load %arg3[%c0_16, %c0_17] : memref<16x32xf32, #tpu.memory_space<vmem>>, vector<16x32xf32>
      %26 = arith.extf %3 : vector<16x32xbf16> to vector<16x32xf32>
      %27 = arith.mulf %26, %25 : vector<16x32xf32>
      %cst_18 = arith.constant dense<0.000000e+00> : vector<16xf32>
      %28 = vector.multi_reduction <add>, %27, %cst_18 [1] : vector<16x32xf32> to vector<16xf32>
      %29 = vector.shape_cast %28 : vector<16xf32> to vector<16x1xf32>
      %c0_19 = arith.constant 0 : index
      %c0_20 = arith.constant 0 : index
      %30 = vector.load %arg6[%c0_19, %c0_20] : memref<16x1xf32, #tpu.memory_space<vmem>>, vector<16x1xf32>
      %c0_21 = arith.constant 0 : index
      %c0_22 = arith.constant 0 : index
      %31 = vector.load %arg7[%c0_21, %c0_22] : memref<16x1xf32, #tpu.memory_space<vmem>>, vector<16x1xf32>
      %32 = math.log %31 : vector<16x1xf32>
      %33 = arith.addf %30, %32 : vector<16x1xf32>
      %34 = arith.subf %33, %29 : vector<16x1xf32>
      %c0_23 = arith.constant 0 : index
      %c0_24 = arith.constant 0 : index
      %35 = vector.load %arg5[%c0_23, %c0_24] : memref<16x1xf32, #tpu.memory_space<vmem>>, vector<16x1xf32>
      tpu.vector_store %arg5[%c0_23, %c0_24], %34 {strides = array<i32>} : memref<16x1xf32, #tpu.memory_space<vmem>>, vector<16x1xf32>,
    } else {
    }
    return
  }
  func.func @transform_0(%arg0: i32, %arg1: i32) -> (i32, i32) {
    %c0_i32 = arith.constant 0 : i32
    %c0_i32_0 = arith.constant 0 : i32
    return %arg0, %c0_i32 : i32, i32
  }
  func.func @transform_1(%arg0: i32, %arg1: i32) -> (i32, i32) {
    %c0_i32 = arith.constant 0 : i32
    %c0_i32_0 = arith.constant 0 : i32
    return %arg0, %c0_i32 : i32, i32
  }
  func.func @transform_2(%arg0: i32, %arg1: i32) -> (i32, i32) {
    %c0_i32 = arith.constant 0 : i32
    %c0_i32_0 = arith.constant 0 : i32
    return %c0_i32, %arg1 : i32, i32
  }
  func.func @transform_3(%arg0: i32, %arg1: i32) -> (i32, i32) {
    %c0_i32 = arith.constant 0 : i32
    %c0_i32_0 = arith.constant 0 : i32
    return %arg0, %c0_i32 : i32, i32
  }
}

</mosaic_0001>

<bundles_post_ra>
// kernel: tpu_custom_call.1
= control target key start
LH: loop header
LB: loop body
LE: loop exit
PB: predicated region body
PF: predicated region fallthrough
CT: control target
= control target key end

     0   :  { %8 = vsyncpa [#allocation5], 0  ;;  %s380_s0 = inlined_call_operand.hbm [shape: bf16[16,32], index: 0, kind: input, shape index: {}]   ;;  %s381_s1 = inlined_call_operand.hbm [shape: f32[16,32], index: 1, kind: input, shape index: {}]   ;;  %s382_s2 = inlined_call_operand.hbm [shape: bf16[32,128], index: 2, kind: input, shape index: {}]   ;;  %s383_s3 = inlined_call_operand.vmem [shape: f32[16,1], index: 3, kind: output, shape index: {}]  }
   0x1   :  { %9 = vsyncpa [#allocation7], 0  ;;  %s321_s12 = smov [#allocation6]  }
   0x2   :  { %s27_s13 = sshll.u32 %s321_s12, 4  ;;  %s28_s13 = int_to_ptr.vmem [resolvable:$true] %s27_s13 }
   0x3   :  { %s265_s14 = scalar_lea.vmem %s28_s13, 256  ;;  %p270_p1 = scmp.lt.s32.totalorder %s28_s13, %s28_s13 }
   0x4   :  { %p266_p0 = scmp.ne.s32.totalorder %s28_s13, %s265_s14  ;;  %p271_p2 = scmp.lt.s32.totalorder %s265_s14, %s265_s14 }
   0x6   :  { %p272_p3 = por %p271_p2, %p270_p1 }
   0x8   :  { %p273_p4 = pnand %p272_p3, %p266_p0 }
   0xa   :  { %276 = shalt.err (!%p273_p4)
}
   0xb   :  { %s322_s15 = smov 128   ;;  %s323_s16 = smov 8  }
   0xc   :  { %33 = dma.hbm_to_vmem [thread:$0]  %s381_s1, 256, %s28_s13, [#allocation7], %s322_s15, %s322_s15, %s323_s16  }
   0xd   :  { %s324_s19 = smov [#allocation4]  }
   0xe   :  { %s15_s20 = sshll.u32 %s324_s19, 4  ;;  %s16_s20 = int_to_ptr.vmem [resolvable:$true] %s15_s20 }
   0xf   :  { %s285_s21 = scalar_lea.vmem %s16_s20, 128  ;;  %p290_p6 = scmp.lt.s32.totalorder %s16_s20, %s16_s20 }
  0x10   :  { %p286_p5 = scmp.ne.s32.totalorder %s16_s20, %s285_s21  ;;  %p291_p7 = scmp.lt.s32.totalorder %s285_s21, %s285_s21 }
  0x12   :  { %p292_p8 = por %p291_p7, %p290_p6 }
  0x14   :  { %p293_p9 = pnand %p292_p8, %p286_p5 }
  0x16   :  { %296 = shalt.err (!%p293_p9)
}
  0x17   :  { %s325_s22 = smov 64   ;;  %s326_s23 = smov 4  }
  0x18   :  { %21 = dma.hbm_to_vmem [thread:$0]  %s380_s0, 128, %s16_s20, [#allocation5], %s325_s22, %s325_s22, %s326_s23  }
  0x19   :  { %s327_s26 = smov [#allocation8]  }
  0x1a   :  { %s39_s27 = sshll.u32 %s327_s26, 4  ;;  %s40_s27 = int_to_ptr.vmem [resolvable:$true] %s39_s27 }
  0x1b   :  { %s305_s1 = scalar_lea.vmem %s40_s27, 256  ;;  %p310_p11 = scmp.lt.s32.totalorder %s40_s27, %s40_s27 }
  0x1c   :  { %p306_p10 = scmp.ne.s32.totalorder %s40_s27, %s305_s1  ;;  %p311_p12 = scmp.lt.s32.totalorder %s305_s1, %s305_s1 }
  0x1e   :  { %p312_p13 = por %p311_p12, %p310_p11 }
  0x20   :  { %p313_p0 = pnand %p312_p13, %p306_p10 }
  0x22   :  { %316 = shalt.err (!%p313_p0)
}
  0x23   :  { %45 = dma.hbm_to_vmem [thread:$0]  %s382_s2, 256, %s40_s27, [#allocation7], %s325_s22, %s325_s22, %s326_s23  }
  0x24   :  { %317 = dma.done.wait [#allocation5], 128  }
  0x25   :  { %318 = vsyncadd [#allocation5], 4294967168 }
  0x26   :  { %319 = dma.done.wait [#allocation7], 512  }
  0x27   :  { %320 = vsyncadd [#allocation7], 4294966784  ;;  %vm60_vm0 = vcmask 7168   ;;  %v328_v0 = vmov 0.0   ;;  %vm329_vm1 = vmmov 0   ;;  %v241_v1 = vld [vmem:[#allocation8 + $0x8] sm:$0xff]  }
  0x28   :  { %63 = vst.msk [vmem:[#allocation3] sm:$0xff] %vm60_vm0, %v328_v0  ;;  %64 = vst.msk [vmem:[#allocation3 + $0x8] sm:$0xff] %vm60_vm0, %v328_v0  ;;  %220 = vmatprep.subr.bf16.mxu0 %v328_v0  ;;  %224 = vmatprep.mubr.msk.bf16.mxu0 %vm329_vm1, %v328_v0  ;;  %v242_v2 = vld [vmem:[#allocation8] sm:$0xff]   ;;  %v65_v3 = vld [vmem:[#allocation4] sm:$0xff]   ;;  %vm88_vm2 = vcmask 261120   ;;  %v330_v4 = vmov -inf  }
  0x29   :  { %221 = vmatpush3.bf16.msra.mxu0 %v241_v1  ;;  %61 = vst.msk [vmem:[#allocation2] sm:$0xff] %vm60_vm0, %v330_v4  ;;  %62 = vst.msk [vmem:[#allocation2 + $0x8] sm:$0xff] %vm60_vm0, %v330_v4  ;;  %v331_v9 = vmov 0   ;;  %v183_v24 = vunpack.c.l.bf16 %v65_v3  ;;  %v181_v25 = vld [vmem:[#allocation6] sm:$0xff]  ;;  %v184_v27 = vunpack.c.h.bf16 %v65_v3  ;;  %v182_v28 = vld [vmem:[#allocation6 + $0x8] sm:$0xff] }
  0x2a   :  { %222 = vmatprep.subr.bf16.mxu0 %v328_v0  ;;  %239 = vset.pattern.permute.xlu1 %v331_v9 }
  0x2b   :  { %240 = vset.pattern.permute.xlu0 %v331_v9  ;;  %v185_v26 = vmul.f32 %v183_v24, %v181_v25  ;;  %v186_v31 = vmul.f32 %v184_v27, %v182_v28 }
  0x2d   :  { %223 = vmatpush3.bf16.msra.mxu0 %v242_v2  ;;  %v187_v30 = vsel %vm88_vm2, %v185_v26, 0.0  ;;  %v190_v33 = vsel %vm88_vm2, %v186_v31, 0.0 }
  0x2f   :  { %v141_v37 = vld [vmem:[#allocation3] sm:$0xff]  ;;  %v142_v41 = vld [vmem:[#allocation3 + $0x8] sm:$0xff] }
  0x30   :  { %225 = vmatmul.mubr.msk.bf16.vlgmr.msra.gmra.mxu0 %vm88_vm2, %v65_v3  ;;  %v133_v10 = vld [vmem:[#allocation2] sm:$0xff]  ;;  %v134_v13 = vld [vmem:[#allocation2 + $0x8] sm:$0xff] }
  0xf0   :  { %v126_v5 = vpop.f32.mrf.mxu0 }
  0xf1   :  { %135 = vmax.xlane.f32.xlu0 %v126_v5 }
  0xf2   :  { %v226_v6 = vpop.f32.mrf.mxu0 }
  0xf4   :  { %v129_v7 = vpop.f32.mrf.mxu0 }
  0xf5   :  { %137 = vmax.xlane.f32.xlu0 %v129_v7 }
  0xf6   :  { %v227_v8 = vpop.f32.mrf.mxu0 }
 0x17a   :  { %v136_v11 = vpop.xlane.xlu0 %135 }
 0x17b   :  { %v139_v12 = vmax.f32 %v133_v10, %v136_v11 }
 0x17d   :  { %v143_v14 = vsub.f32 %v133_v10, %v139_v12  ;;  %176 = vst.msk [vmem:[#allocation2] sm:$0xff] %vm60_vm0, %v139_v12  ;;  %153 = vperm.xlu1 %239, %v139_v12  }
 0x17e   :  { %v138_v15 = vpop.xlane.xlu0 %137 }
 0x17f   :  { %v140_v16 = vmax.f32 %v134_v13, %v138_v15  ;;  %v145_v34 = vmul.f32 1.442695, %v143_v14 }
 0x181   :  { %v144_v17 = vsub.f32 %v134_v13, %v140_v16  ;;  %177 = vst.msk [vmem:[#allocation2 + $0x8] sm:$0xff] %vm60_vm0, %v140_v16  ;;  %158 = vperm.xlu1 %239, %v140_v16  }
 0x183   :  { %v147_v35 = vmul.f32 1.442695, %v144_v17 }
 0x184   :  { %v193_v51 = vld [vmem:[#allocation2] sm:$0xff] }
 0x188   :  { %v194_v56 = vld [vmem:[#allocation2 + $0x8] sm:$0xff] }
 0x1f8   :  { %v154_v18 = vpop.permute.xlu1 %153 }
 0x1f9   :  { %v161_v19 = vsub.f32 %v126_v5, %v154_v18 }
 0x1fb   :  { %v163_v20 = vmul.f32 1.442695, %v161_v19 }
 0x1fc   :  { %v159_v21 = vpop.permute.xlu1 %158 }
 0x1fd   :  { %245 = vpow2.f32 %v163_v20  ;;  %v162_v22 = vsub.f32 %v129_v7, %v159_v21 }
 0x1ff   :  { %v165_v23 = vmul.f32 1.442695, %v162_v22 }
 0x201   :  { %247 = vpow2.f32 %v165_v23 }
 0x202   :  { %249 = vpow2.f32 %v145_v34 }
 0x203   :  { %251 = vpow2.f32 %v147_v35 }
 0x20a   :  { %v246_v29 = vpop.eup %245 }
 0x20b   :  { %167 = vadd.xlane.f32.xlu0 %v246_v29 }
 0x20e   :  { %v248_v32 = vpop.eup %247 }
 0x20f   :  { %169 = vadd.xlane.f32.xlu1 %v248_v32  ;;  %188 = vadd.xlane.f32.xlu0 %v187_v30  ;;  %v250_v36 = vpop.eup %249 }
 0x210   :  { %v149_v38 = vmul.f32 %v250_v36, %v141_v37  ;;  %v252_v39 = vpop.eup %251 }
 0x211   :  { %v150_v43 = vmul.f32 %v252_v39, %v142_v41 }
 0x213   :  { %191 = vadd.xlane.f32.xlu0 %v190_v33 }
 0x294   :  { %v168_v40 = vpop.xlane.xlu0 %167 }
 0x295   :  { %v171_v42 = vadd.f32 %v168_v40, %v149_v38 }
 0x297   :  { %174 = vst.msk [vmem:[#allocation3] sm:$0xff] %vm60_vm0, %v171_v42 }
 0x298   :  { %v170_v44 = vpop.xlane.xlu1 %169  ;;  %v189_v49 = vpop.xlane.xlu0 %188 }
 0x299   :  { %v172_v45 = vadd.f32 %v170_v44, %v150_v43 }
 0x29b   :  { %175 = vst.msk [vmem:[#allocation3 + $0x8] sm:$0xff] %vm60_vm0, %v172_v45 }
 0x29c   :  { %v192_v57 = vpop.xlane.xlu0 %191 }
 0x29e   :  { %v195_v46 = vld [vmem:[#allocation3] sm:$0xff] }
 0x29f   :  { %253 = vlog2.f32 %v195_v46 }
 0x2a2   :  { %v196_v47 = vld [vmem:[#allocation3 + $0x8] sm:$0xff] }
 0x2a3   :  { %255 = vlog2.f32 %v196_v47 }
 0x2ac   :  { %v254_v48 = vpop.eup %253 }
 0x2ad   :  { %v198_v50 = vmul.f32 0.6931472, %v254_v48 }
 0x2af   :  { %v201_v52 = vadd.f32 %v198_v50, %v193_v51 }
 0x2b0   :  { %v256_v53 = vpop.eup %255 }
 0x2b1   :  { %v203_v54 = vsub.f32 %v201_v52, %v189_v49  ;;  %v200_v55 = vmul.f32 0.6931472, %v256_v53 }
 0x2b3   :  { %205 = vst.msk [vmem:[%s383_s3] sm:$0xff] %vm60_vm0, %v203_v54  ;;  %v202_v58 = vadd.f32 %v200_v55, %v194_v56 }
 0x2b5   :  { %v204_v59 = vsub.f32 %v202_v58, %v192_v57 }
 0x2b7   :  { %206 = vst.msk [vmem:[%s383_s3 + $0x8] sm:$0xff] %vm60_vm0, %v204_v59 }
 0x2b8   :  { %211 = vsyncpa [#allocation5], 1 }
 0x2b9   :  { %212 = vsyncpa [#allocation7], 1 }

</bundles_post_ra>
